<compile_context>
chip_gen: v5e
topology: v5e:2x2
jax: 0.10.0
libtpu: 0.0.40
codegen_flags: <defaults>
</compile_context>

<pallas_src>
import functools

import jax
import jax.numpy as jnp
from jax.experimental import pallas as pl
from jax.experimental.pallas import tpu as pltpu

KH, KW = 3, 3


def _conv3x3_sigmoid_kernel(x_ref, w_ref, m_ref, b_ref, o_ref, *, W, n, cin):
    """Fused 3x3 same-conv (Cout=1) + bias + sigmoid over the whole batch.

    x_ref: (N*Cin, H*W)   f32 VMEM  -- batch*channel on sublanes, spatial on lanes
    w_ref: (N*Cin, KH*KW) f32 VMEM  -- per-row tap weights (weight[0, c] tiled over N)
    m_ref: (4, H*W)       f32 VMEM  -- [not_top, not_bot, not_left, not_right] 0/1 masks
    b_ref: (1,)           f32 SMEM
    o_ref: (N, H*W)       f32 VMEM  -- lane-dense output slab
    """
    NC, HW = x_ref.shape

    x = x_ref[...]           # (NC, HW): 2 full vregs at NC=8, HW=256
    w = w_ref[...]           # (NC, 9)

    # Hoisted mask broadcasts (done once; JAX does not CSE broadcast_in_dim).
    not_top = jnp.broadcast_to(m_ref[0:1, :], (NC, HW))
    not_bot = jnp.broadcast_to(m_ref[1:2, :], (NC, HW))
    not_left = jnp.broadcast_to(m_ref[2:3, :], (NC, HW))
    not_right = jnp.broadcast_to(m_ref[3:4, :], (NC, HW))

    acc = jnp.zeros((NC, HW), jnp.float32)
    for kh in range(KH):
        dh = kh - 1
        row_acc = None
        for kw in range(KW):
            dw = kw - 1
            off = dh * W + dw          # flat-index shift for this tap
            shift = (-off) % HW        # jnp.roll convention: out[p] = x[p + off]

            # One XLU lane rotation + one VPU multiply per tap for the whole
            # (N*Cin, HW) slab; weight varies per sublane.
            xs = x if shift == 0 else pltpu.roll(x, shift=shift, axis=1)
            t = kh * KW + kw
            term = w[:, t:t + 1] * xs

            # Horizontal zero-padding validity (source column must exist).
            if dw == -1:
                term = term * not_left
            elif dw == 1:
                term = term * not_right
            row_acc = term if row_acc is None else row_acc + term

        # Vertical validity shared by all 3 taps of this kernel row.
        if dh == -1:
            row_acc = row_acc * not_top
        elif dh == 1:
            row_acc = row_acc * not_bot
        acc = acc + row_acc

    # Channel reduction once at the end: one sublane reduce per batch element,
    # then bias + sigmoid (EUP) and an unmasked lane-dense store.
    b = b_ref[0]
    for i in range(n):
        group = acc[i * cin:(i + 1) * cin, :]          # (Cin, HW) static slice
        red = jnp.sum(group, axis=0, keepdims=True)    # (1, HW)
        o_ref[i:i + 1, :] = jax.nn.sigmoid(red + b)


def model_forward(sample_nchw, weight, bias):
    """sample_nchw: (N, Cin, H, W) f32
       weight     : (1, Cin, KH, KW) f32 (PyTorch conv layout, Cout=1)
       bias       : (1,) f32
       returns    : (N, 1, H, W) f32  == sigmoid(conv2d(sample, pad=1) + bias)
    """
    N, Cin, H, W = sample_nchw.shape
    Cout = weight.shape[0]
    assert Cout == 1 and weight.shape == (Cout, Cin, KH, KW)
    HW = H * W

    # NCHW kept native: folding (N, Cin) onto rows and (H, W) onto lanes is a
    # free contiguous reshape (no transpose, no padded copy in HBM).
    x_flat = sample_nchw.reshape(N * Cin, HW)

    # Per-row tap weights: row n*Cin + c carries weight[0, c, :, :] (9 taps).
    w_tile = jnp.tile(weight.reshape(Cin, KH * KW), (N, 1))   # (N*Cin, 9)
    b_flat = bias.reshape(Cout)

    # Zero-padding validity masks, precomputed on host side (works for any W,
    # no in-kernel integer div/mod).
    p = jnp.arange(HW, dtype=jnp.int32)
    hh = p // W
    ww = p % W
    masks = jnp.stack(
        [
            (hh >= 1).astype(jnp.float32),       # not_top   (source row h-1 exists)
            (hh < H - 1).astype(jnp.float32),    # not_bot   (source row h+1 exists)
            (ww >= 1).astype(jnp.float32),       # not_left  (source col w-1 exists)
            (ww < W - 1).astype(jnp.float32),    # not_right (source col w+1 exists)
        ],
        axis=0,
    )                                            # (4, HW)

    kernel = functools.partial(_conv3x3_sigmoid_kernel, W=W, n=N, cin=Cin)

    # Single grid step: the whole (tiny) batch is processed in one invocation;
    # all tensors are whole-array VMEM blocks, bias lives in SMEM.
    out_flat = pl.pallas_call(
        kernel,
        out_shape=jax.ShapeDtypeStruct((N, HW), jnp.float32),
        in_specs=[
            pl.BlockSpec(memory_space=pltpu.MemorySpace.VMEM),
            pl.BlockSpec(memory_space=pltpu.MemorySpace.VMEM),
            pl.BlockSpec(memory_space=pltpu.MemorySpace.VMEM),
            pl.BlockSpec(memory_space=pltpu.MemorySpace.SMEM),
        ],
        out_specs=pl.BlockSpec(memory_space=pltpu.MemorySpace.VMEM),
    )(x_flat, w_tile, masks, b_flat)

    # Free contiguous reshape back to NCHW.
    return out_flat.reshape(N, Cout, H, W)


def reference_forward(sample_nchw, weight, bias):
    """Pure-JAX reference: conv2d(padding=1) + bias + sigmoid."""
    out = jax.lax.conv_general_dilated(
        sample_nchw, weight,
        window_strides=(1, 1), padding=((1, 1), (1, 1)),
        dimension_numbers=("NCHW", "OIHW", "NCHW"))
    return jax.nn.sigmoid(out + bias.reshape(1, -1, 1, 1))


if __name__ == "__main__":
    key = jax.random.PRNGKey(0)
    k_x, k_w, k_b = jax.random.split(key, 3)

    N, Cin, H, W = 2, 4, 16, 16
    Cout = 1

    sample = jax.random.normal(k_x, (N, Cin, H, W), dtype=jnp.float32)
    fan_in = Cin * KH * KW
    weight = jax.random.normal(k_w, (Cout, Cin, KH, KW), jnp.float32) / jnp.sqrt(fan_in)
    bias = jax.random.normal(k_b, (Cout,), jnp.float32) * 0.01

    pred = model_forward(sample, weight, bias)
    pred = jax.block_until_ready(pred)

    ref = reference_forward(sample, weight, bias)
    assert pred.shape == (N, Cout, H, W)
    assert jnp.allclose(pred, ref, atol=1e-5, rtol=1e-5), "mismatch vs reference"

    print("KERNEL_OK")
</pallas_src>

<mosaic_0001>
module attributes {stable_mosaic.version = 11 : i64} {
  func.func @_conv3x3_sigmoid_kernel(%arg0: memref<8x256xf32, #tpu.memory_space<vmem>>, %arg1: memref<8x9xf32, #tpu.memory_space<vmem>>, %arg2: memref<4x256xf32, #tpu.memory_space<vmem>>, %arg3: memref<1xf32, #tpu.memory_space<smem>>, %arg4: memref<2x256xf32, #tpu.memory_space<vmem>>) attributes {dimension_semantics = [], scalar_prefetch = 0 : i64, scratch_operands = 0 : i64, tpu.core_type = #tpu.core_type<tc>} {
    %c0 = arith.constant 0 : index
    %c0_0 = arith.constant 0 : index
    %0 = vector.load %arg0[%c0, %c0_0] : memref<8x256xf32, #tpu.memory_space<vmem>>, vector<8x256xf32>
    %c0_1 = arith.constant 0 : index
    %c0_2 = arith.constant 0 : index
    %1 = vector.load %arg1[%c0_1, %c0_2] : memref<8x9xf32, #tpu.memory_space<vmem>>, vector<8x9xf32>
    %c0_3 = arith.constant 0 : index
    %c0_4 = arith.constant 0 : index
    %2 = vector.load %arg2[%c0_3, %c0_4] : memref<4x256xf32, #tpu.memory_space<vmem>>, vector<1x256xf32>
    %3 = vector.shape_cast %2 : vector<1x256xf32> to vector<1x256xf32>
    %4 = vector.broadcast %3 : vector<1x256xf32> to vector<8x256xf32>
    %c1 = arith.constant 1 : index
    %c0_5 = arith.constant 0 : index
    %5 = vector.load %arg2[%c1, %c0_5] : memref<4x256xf32, #tpu.memory_space<vmem>>, vector<1x256xf32>
    %6 = vector.shape_cast %5 : vector<1x256xf32> to vector<1x256xf32>
    %7 = vector.broadcast %6 : vector<1x256xf32> to vector<8x256xf32>
    %c2 = arith.constant 2 : index
    %c0_6 = arith.constant 0 : index
    %8 = vector.load %arg2[%c2, %c0_6] : memref<4x256xf32, #tpu.memory_space<vmem>>, vector<1x256xf32>
    %9 = vector.shape_cast %8 : vector<1x256xf32> to vector<1x256xf32>
    %10 = vector.broadcast %9 : vector<1x256xf32> to vector<8x256xf32>
    %c3 = arith.constant 3 : index
    %c0_7 = arith.constant 0 : index
    %11 = vector.load %arg2[%c3, %c0_7] : memref<4x256xf32, #tpu.memory_space<vmem>>, vector<1x256xf32>
    %12 = vector.shape_cast %11 : vector<1x256xf32> to vector<1x256xf32>
    %13 = vector.broadcast %12 : vector<1x256xf32> to vector<8x256xf32>
    %cst = arith.constant 0.000000e+00 : f32
    %14 = vector.broadcast %cst : f32 to vector<8x256xf32>
    %c17_i32 = arith.constant 17 : i32
    %15 = tpu.dynamic_rotate %0 by %c17_i32 dim 1 : vector<8x256xf32>, i32 -> vector<8x256xf32>
    %16 = vector.extract_strided_slice %1 {offsets = [0, 0], sizes = [8, 1], strides = [1, 1]} : vector<8x9xf32> to vector<8x1xf32>
    %17 = vector.broadcast %16 : vector<8x1xf32> to vector<8x256xf32>
    %18 = arith.mulf %17, %15 : vector<8x256xf32>
    %19 = arith.mulf %18, %10 : vector<8x256xf32>
    %c16_i32 = arith.constant 16 : i32
    %20 = tpu.dynamic_rotate %0 by %c16_i32 dim 1 : vector<8x256xf32>, i32 -> vector<8x256xf32>
    %21 = vector.extract_strided_slice %1 {offsets = [0, 1], sizes = [8, 1], strides = [1, 1]} : vector<8x9xf32> to vector<8x1xf32>
    %22 = vector.broadcast %21 : vector<8x1xf32> to vector<8x256xf32>
    %23 = arith.mulf %22, %20 : vector<8x256xf32>
    %24 = arith.addf %19, %23 : vector<8x256xf32>
    %c15_i32 = arith.constant 15 : i32
    %25 = tpu.dynamic_rotate %0 by %c15_i32 dim 1 : vector<8x256xf32>, i32 -> vector<8x256xf32>
    %26 = vector.extract_strided_slice %1 {offsets = [0, 2], sizes = [8, 1], strides = [1, 1]} : vector<8x9xf32> to vector<8x1xf32>
    %27 = vector.broadcast %26 : vector<8x1xf32> to vector<8x256xf32>
    %28 = arith.mulf %27, %25 : vector<8x256xf32>
    %29 = arith.mulf %28, %13 : vector<8x256xf32>
    %30 = arith.addf %24, %29 : vector<8x256xf32>
    %31 = arith.mulf %30, %4 : vector<8x256xf32>
    %32 = arith.addf %14, %31 : vector<8x256xf32>
    %c1_i32 = arith.constant 1 : i32
    %33 = tpu.dynamic_rotate %0 by %c1_i32 dim 1 : vector<8x256xf32>, i32 -> vector<8x256xf32>
    %34 = vector.extract_strided_slice %1 {offsets = [0, 3], sizes = [8, 1], strides = [1, 1]} : vector<8x9xf32> to vector<8x1xf32>
    %35 = vector.broadcast %34 : vector<8x1xf32> to vector<8x256xf32>
    %36 = arith.mulf %35, %33 : vector<8x256xf32>
    %37 = arith.mulf %36, %10 : vector<8x256xf32>
    %38 = vector.extract_strided_slice %1 {offsets = [0, 4], sizes = [8, 1], strides = [1, 1]} : vector<8x9xf32> to vector<8x1xf32>
    %39 = vector.broadcast %38 : vector<8x1xf32> to vector<8x256xf32>
    %40 = arith.mulf %39, %0 : vector<8x256xf32>
    %41 = arith.addf %37, %40 : vector<8x256xf32>
    %c255_i32 = arith.constant 255 : i32
    %42 = tpu.dynamic_rotate %0 by %c255_i32 dim 1 : vector<8x256xf32>, i32 -> vector<8x256xf32>
    %43 = vector.extract_strided_slice %1 {offsets = [0, 5], sizes = [8, 1], strides = [1, 1]} : vector<8x9xf32> to vector<8x1xf32>
    %44 = vector.broadcast %43 : vector<8x1xf32> to vector<8x256xf32>
    %45 = arith.mulf %44, %42 : vector<8x256xf32>
    %46 = arith.mulf %45, %13 : vector<8x256xf32>
    %47 = arith.addf %41, %46 : vector<8x256xf32>
    %48 = arith.addf %32, %47 : vector<8x256xf32>
    %c241_i32 = arith.constant 241 : i32
    %49 = tpu.dynamic_rotate %0 by %c241_i32 dim 1 : vector<8x256xf32>, i32 -> vector<8x256xf32>
    %50 = vector.extract_strided_slice %1 {offsets = [0, 6], sizes = [8, 1], strides = [1, 1]} : vector<8x9xf32> to vector<8x1xf32>
    %51 = vector.broadcast %50 : vector<8x1xf32> to vector<8x256xf32>
    %52 = arith.mulf %51, %49 : vector<8x256xf32>
    %53 = arith.mulf %52, %10 : vector<8x256xf32>
    %c240_i32 = arith.constant 240 : i32
    %54 = tpu.dynamic_rotate %0 by %c240_i32 dim 1 : vector<8x256xf32>, i32 -> vector<8x256xf32>
    %55 = vector.extract_strided_slice %1 {offsets = [0, 7], sizes = [8, 1], strides = [1, 1]} : vector<8x9xf32> to vector<8x1xf32>
    %56 = vector.broadcast %55 : vector<8x1xf32> to vector<8x256xf32>
    %57 = arith.mulf %56, %54 : vector<8x256xf32>
    %58 = arith.addf %53, %57 : vector<8x256xf32>
    %c239_i32 = arith.constant 239 : i32
    %59 = tpu.dynamic_rotate %0 by %c239_i32 dim 1 : vector<8x256xf32>, i32 -> vector<8x256xf32>
    %60 = vector.extract_strided_slice %1 {offsets = [0, 8], sizes = [8, 1], strides = [1, 1]} : vector<8x9xf32> to vector<8x1xf32>
    %61 = vector.broadcast %60 : vector<8x1xf32> to vector<8x256xf32>
    %62 = arith.mulf %61, %59 : vector<8x256xf32>
    %63 = arith.mulf %62, %13 : vector<8x256xf32>
    %64 = arith.addf %58, %63 : vector<8x256xf32>
    %65 = arith.mulf %64, %7 : vector<8x256xf32>
    %66 = arith.addf %48, %65 : vector<8x256xf32>
    %c0_8 = arith.constant 0 : index
    %67 = memref.load %arg3[%c0_8] : memref<1xf32, #tpu.memory_space<smem>>
    %68 = vector.extract_strided_slice %66 {offsets = [0, 0], sizes = [4, 256], strides = [1, 1]} : vector<8x256xf32> to vector<4x256xf32>
    %cst_9 = arith.constant dense<0.000000e+00> : vector<256xf32>
    %69 = vector.multi_reduction <add>, %68, %cst_9 [0] : vector<4x256xf32> to vector<256xf32>
    %70 = vector.shape_cast %69 : vector<256xf32> to vector<1x256xf32>
    %71 = vector.broadcast %67 : f32 to vector<1x256xf32>
    %72 = arith.addf %70, %71 : vector<1x256xf32>
    %73 = arith.negf %72 : vector<1x256xf32>
    %74 = math.exp %73 : vector<1x256xf32>
    %cst_10 = arith.constant 1.000000e+00 : f32
    %75 = vector.broadcast %cst_10 : f32 to vector<1x256xf32>
    %76 = arith.addf %75, %74 : vector<1x256xf32>
    %77 = arith.divf %75, %76 : vector<1x256xf32>
    %c0_11 = arith.constant 0 : index
    %c0_12 = arith.constant 0 : index
    %78 = vector.load %arg4[%c0_11, %c0_12] : memref<2x256xf32, #tpu.memory_space<vmem>>, vector<1x256xf32>
    tpu.vector_store %arg4[%c0_11, %c0_12], %77 {strides = array<i32>} : memref<2x256xf32, #tpu.memory_space<vmem>>, vector<1x256xf32>,
    %79 = vector.extract_strided_slice %66 {offsets = [4, 0], sizes = [4, 256], strides = [1, 1]} : vector<8x256xf32> to vector<4x256xf32>
    %cst_13 = arith.constant dense<0.000000e+00> : vector<256xf32>
    %80 = vector.multi_reduction <add>, %79, %cst_13 [0] : vector<4x256xf32> to vector<256xf32>
    %81 = vector.shape_cast %80 : vector<256xf32> to vector<1x256xf32>
    %82 = vector.broadcast %67 : f32 to vector<1x256xf32>
    %83 = arith.addf %81, %82 : vector<1x256xf32>
    %84 = arith.negf %83 : vector<1x256xf32>
    %85 = math.exp %84 : vector<1x256xf32>
    %cst_14 = arith.constant 1.000000e+00 : f32
    %86 = vector.broadcast %cst_14 : f32 to vector<1x256xf32>
    %87 = arith.addf %86, %85 : vector<1x256xf32>
    %88 = arith.divf %86, %87 : vector<1x256xf32>
    %c1_15 = arith.constant 1 : index
    %c0_16 = arith.constant 0 : index
    %89 = vector.load %arg4[%c1_15, %c0_16] : memref<2x256xf32, #tpu.memory_space<vmem>>, vector<1x256xf32>
    tpu.vector_store %arg4[%c1_15, %c0_16], %88 {strides = array<i32>} : memref<2x256xf32, #tpu.memory_space<vmem>>, vector<1x256xf32>,
    return
  }
}

</mosaic_0001>

<bundles_post_ra>
// kernel: tpu_custom_call.1
= control target key start
LH: loop header
LB: loop body
LE: loop exit
PB: predicated region body
PF: predicated region fallthrough
CT: control target
= control target key end

     0   :  { %10 = vsyncpa [#allocation4], 0  ;;  %s717_s0 = inlined_call_operand.hbm [shape: f32[8,256], index: 0, kind: input, shape index: {}]   ;;  %s718_s1 = inlined_call_operand.hbm [shape: f32[8,9], index: 1, kind: input, shape index: {}]   ;;  %s719_s2 = inlined_call_operand.hbm [shape: f32[4,256], index: 2, kind: input, shape index: {}]   ;;  %s720_s3 = inlined_call_operand.<no memory space> [shape: f32[1], index: 3, kind: input, shape index: {}]   ;;  %s721_s4 = inlined_call_operand.hbm [shape: f32[2,256], index: 4, kind: output, shape index: {}]  }
   0x1   :  { %11 = vsyncpa [#allocation7], 0  ;;  %s29_s17 = sshll.u32 %s718_s1, 4  ;;  %s30_s17 = int_to_ptr.hbm [resolvable:$true] %s29_s17 }
   0x2   :  { %12 = vsyncpa [#allocation5], 0  ;;  %s543_s18 = smov [#allocation6]   ;;  %s18_s22 = sshll.u32 %s717_s0, 4  ;;  %s19_s22 = int_to_ptr.hbm [resolvable:$true] %s18_s22 }
   0x3   :  { %s31_s19 = sshll.u32 %s543_s18, 4  ;;  %s544_s23 = smov [#allocation3]   ;;  %s32_s19 = int_to_ptr.vmem [resolvable:$true] %s31_s19 }
   0x4   :  { %34 = dma.hbm_to_vmem [thread:$0]  %s30_s17, 128, %s32_s19, [#allocation7]  }
   0x5   :  { %s20_s24 = sshll.u32 %s544_s23, 4  ;;  %s40_s27 = sshll.u32 %s719_s2, 4  ;;  %s21_s24 = int_to_ptr.vmem [resolvable:$true] %s20_s24  ;;  %s41_s27 = int_to_ptr.hbm [resolvable:$true] %s40_s27 }
   0x6   :  { %23 = dma.hbm_to_vmem [thread:$0]  %s19_s22, 256, %s21_s24, [#allocation4]  }
   0x7   :  { %s545_s1 = smov [#allocation8]  }
   0x8   :  { %s42_s28 = sshll.u32 %s545_s1, 4  ;;  %s43_s28 = int_to_ptr.vmem [resolvable:$true] %s42_s28 }
   0x9   :  { %45 = dma.hbm_to_vmem [thread:$0]  %s41_s27, 128, %s43_s28, [#allocation7]  }
   0xa   :  { %537 = dma.done.wait [#allocation4], 256  }
   0xb   :  { %538 = vsyncadd [#allocation4], 4294967040 }
   0xc   :  { %539 = dma.done.wait [#allocation7], 256  }
   0xd   :  { %540 = vsyncadd [#allocation7], 4294967040  ;;  %v546_v0 = vmov 0   ;;  %v547_v1 = vmov 2   ;;  %v548_v2 = vmov 1   ;;  %v62_v3 = vld [vmem:[#allocation6] sm:$0xff]  ;;  %v94_v28 = vlaneseq }
   0xe   :  { %415 = vset.pattern.permute.xlu1 %v546_v0  ;;  %417 = vset.pattern.permute.xlu0 %v547_v1  ;;  %v598_v4 = vld [vmem:[#allocation3] sm:$0xff]  ;;  %v600_v5 = vld [vmem:[#allocation3 + $0x8] sm:$0xff]  ;;  %s549_s0 = smov 17   ;;  %s550_s2 = smov 16   ;;  %v552_v6 = vmov 3   ;;  %v555_v7 = vmov 6  }
   0xf   :  { %416 = vset.pattern.permute.xlu2 %v548_v2  ;;  %101 = vperm.xlu1 %415, %v62_v3   ;;  %s551_s29 = smov 15   ;;  %s553_s30 = smov 1   ;;  %v558_v8 = vmov 4   ;;  %v559_v9 = vmov 7   ;;  %v560_v10 = vmov 5   ;;  %v562_v11 = vmov 8  }
  0x10   :  { %90 = vrot.lane.b32.xlu0 %v598_v4, %s549_s0  ;;  %110 = vrot.lane.b32.xlu2 %v600_v5, %s550_s2  ;;  %s554_s5 = smov 113   ;;  %s556_s6 = smov 127   ;;  %v619_v31 = vand.u32 127, %v94_v28  ;;  %v77_v33 = vld [vmem:[#allocation8 + $0x2] ss:$4 sm:$0x3] }
  0x11   :  { %s557_s7 = smov 112   ;;  %s561_s8 = smov 111   ;;  %v624_v35 = vld [vmem:[#allocation8] ss:$4 sm:$0x3]  ;;  %v79_v40 = vperm.slane %v77_v33, 0 }
  0x12   :  { %vm96_vm0 = vcmp.lt.s32.totalorder %v619_v31, 17  ;;  %v84_v36 = vld [vmem:[#allocation8 + $0x3] ss:$4 sm:$0x3]  ;;  %vm112_vm1 = vcmp.lt.s32.totalorder %v619_v31, 16  ;;  %v80_v41 = vperm.slane %v77_v33, 1 }
  0x13   :  { %vm148_vm2 = vcmp.lt.s32.totalorder %v619_v31, 1  ;;  %vm127_vm3 = vcmp.lt.s32.totalorder %v619_v31, 15  ;;  %vm190_vm4 = vcmp.lt.s32.totalorder %v619_v31, 113  ;;  %v65_v42 = vperm.slane %v624_v35, 0  ;;  %s379_s14 = sshll.u32 %s721_s4, 4  ;;  %s380_s14 = int_to_ptr.hbm [resolvable:$true] %s379_s14 }
  0x14   :  { %v633_v43 = vperm.slane %v84_v36, 0  ;;  %v635_v44 = vperm.slane %v84_v36, 1  ;;  %v66_v47 = vperm.slane %v624_v35, 1  ;;  %vm171_vm5 = vcmp.lt.s32.totalorder %v619_v31, 127 }
  0x15   :  { %vm205_vm6 = vcmp.lt.s32.totalorder %v619_v31, 112  ;;  %vm220_vm7 = vcmp.lt.s32.totalorder %v619_v31, 111  ;;  %vm238_vm8 = vcmask 1043456   ;;  %vm297_vm11 = vcmask 1040384  }
  0x16   :  { %vm680_vm12 = vcmp.lt.s32.totalorder %v94_v28, 256 }
  0x17   :  { %108 = vrot.lane.b32.xlu1 %v598_v4, %s550_s2 }
  0x18   :  { %92 = vrot.lane.b32.xlu0 %v600_v5, %s549_s0  ;;  %123 = vrot.lane.b32.xlu2 %v598_v4, %s551_s29 }
  0x19   :  { %418 = vset.pattern.permute.xlu1 %v552_v6 }
  0x1f   :  { %144 = vrot.lane.b32.xlu1 %v598_v4, %s553_s30 }
  0x20   :  { %125 = vrot.lane.b32.xlu0 %v600_v5, %s551_s29  ;;  %146 = vrot.lane.b32.xlu2 %v600_v5, %s553_s30 }
  0x27   :  { %188 = vrot.lane.b32.xlu1 %v600_v5, %s554_s5 }
  0x28   :  { %186 = vrot.lane.b32.xlu0 %v598_v4, %s554_s5  ;;  %116 = vperm.xlu2 %416, %v62_v3  }
  0x2f   :  { %152 = vperm.xlu1 %418, %v62_v3  }
  0x30   :  { %131 = vperm.xlu0 %417, %v62_v3   ;;  %419 = vset.pattern.permute.xlu2 %v555_v7 }
  0x31   :  { %194 = vperm.xlu2 %419, %v62_v3  }
  0x37   :  { %167 = vrot.lane.b32.xlu1 %v598_v4, %s556_s6 }
  0x38   :  { %201 = vrot.lane.b32.xlu0 %v598_v4, %s557_s7  ;;  %420 = vset.pattern.permute.xlu1 %v558_v8 }
  0x39   :  { %422 = vset.pattern.permute.xlu0 %v559_v9  ;;  %169 = vrot.lane.b32.xlu2 %v600_v5, %s556_s6 }
  0x3a   :  { %421 = vset.pattern.permute.xlu2 %v560_v10 }
  0x3f   :  { %203 = vrot.lane.b32.xlu1 %v600_v5, %s557_s7 }
  0x40   :  { %218 = vrot.lane.b32.xlu0 %v600_v5, %s561_s8 }
  0x41   :  { %216 = vrot.lane.b32.xlu2 %v598_v4, %s561_s8 }
  0x47   :  { %160 = vperm.xlu1 %420, %v62_v3  }
  0x48   :  { %209 = vperm.xlu0 %422, %v62_v3  }
  0x49   :  { %175 = vperm.xlu2 %421, %v62_v3  }
  0x4f   :  { %423 = vset.pattern.permute.xlu1 %v562_v11 }
  0x50   :  { %424 = vset.pattern.permute.xlu0 %v562_v11  ;;  %224 = vperm.xlu1 %423, %v62_v3  }
  0x6a   :  { %v111_v12 = vpop.permute.xlu2 %110 }
  0x72   :  { %v124_v13 = vpop.permute.xlu2 %123 }
  0x7a   :  { %v147_v18 = vpop.permute.xlu2 %146 }
  0x81   :  { %v102_v14 = vpop.permute.xlu1 %101 }
  0x82   :  { %v91_v15 = vpop.permute.xlu0 %90  ;;  %v117_v21 = vpop.permute.xlu2 %116 }
  0x89   :  { %v109_v16 = vpop.permute.xlu1 %108 }
  0x8a   :  { %v93_v17 = vpop.permute.xlu0 %92  ;;  %v113_v48 = vsel %vm112_vm1, %v109_v16, %v111_v12  ;;  %v114_v49 = vsel %vm112_vm1, %v111_v12, %v109_v16 }
  0x8b   :  { %v195_v24 = vpop.permute.xlu2 %194  ;;  %v97_v38 = vsel %vm96_vm0, %v91_v15, %v93_v17  ;;  %v98_v39 = vsel %vm96_vm0, %v93_v17, %v91_v15  ;;  %v119_v63 = vmul.f32 %v117_v21, %v114_v49  ;;  %v120_v0 = vmul.f32 %v117_v21, %v113_v48 }
  0x8c   :  { %v104_v45 = vmul.f32 %v102_v14, %v98_v39  ;;  %v105_v46 = vmul.f32 %v102_v14, %v97_v38 }
  0x8e   :  { %v106_v61 = vmul.f32 %v104_v45, %v79_v40  ;;  %v107_v62 = vmul.f32 %v105_v46, %v80_v41 }
  0x91   :  { %v145_v19 = vpop.permute.xlu1 %144 }
  0x92   :  { %v126_v20 = vpop.permute.xlu0 %125  ;;  %v149_v50 = vsel %vm148_vm2, %v145_v19, %v147_v18  ;;  %v150_v51 = vsel %vm148_vm2, %v147_v18, %v145_v19  ;;  %v121_v19 = vadd.f32 %v119_v63, %v106_v61 }
  0x93   :  { %v170_v27 = vpop.permute.xlu2 %169  ;;  %v128_v52 = vsel %vm127_vm3, %v124_v13, %v126_v20  ;;  %v129_v53 = vsel %vm127_vm3, %v126_v20, %v124_v13  ;;  %v122_v20 = vadd.f32 %v120_v0, %v107_v62 }
  0x99   :  { %v189_v22 = vpop.permute.xlu1 %188 }
  0x9a   :  { %v187_v23 = vpop.permute.xlu0 %186 }
  0x9b   :  { %v622_v34 = vpop.permute.xlu2 %216  ;;  %v191_v54 = vsel %vm190_vm4, %v187_v23, %v189_v22  ;;  %v192_v55 = vsel %vm190_vm4, %v189_v22, %v187_v23 }
  0x9c   :  { %v197_v6 = vmul.f32 %v195_v24, %v191_v54  ;;  %v198_v7 = vmul.f32 %v195_v24, %v192_v55 }
  0xa1   :  { %v153_v25 = vpop.permute.xlu1 %152 }
  0xa2   :  { %v132_v26 = vpop.permute.xlu0 %131  ;;  %v155_v57 = vmul.f32 %v153_v25, %v150_v51  ;;  %v156_v58 = vmul.f32 %v153_v25, %v149_v50  ;;  %v200_v25 = vmul.f32 %v198_v7, %v80_v41 }
  0xa3   :  { %v134_v59 = vmul.f32 %v132_v26, %v129_v53  ;;  %v135_v60 = vmul.f32 %v132_v26, %v128_v52  ;;  %v176_v1 = vpop.permute.xlu2 %175 }
  0xa4   :  { %v157_v11 = vmul.f32 %v155_v57, %v79_v40  ;;  %v158_v12 = vmul.f32 %v156_v58, %v80_v41 }
  0xa5   :  { %v136_v13 = vmul.f32 %v134_v59, %v633_v43  ;;  %v137_v14 = vmul.f32 %v135_v60, %v635_v44 }
  0xa7   :  { %v138_v26 = vadd.f32 %v136_v13, %v121_v19 }
  0xa9   :  { %v168_v29 = vpop.permute.xlu1 %167  ;;  %v140_v31 = vmul.f32 %v138_v26, %v65_v42 }
  0xaa   :  { %v202_v30 = vpop.permute.xlu0 %201  ;;  %v172_v2 = vsel %vm171_vm5, %v168_v29, %v170_v27  ;;  %v173_v3 = vsel %vm171_vm5, %v170_v27, %v168_v29  ;;  %v139_v27 = vadd.f32 %v137_v14, %v122_v20 }
  0xab   :  { %v178_v15 = vmul.f32 %v176_v1, %v172_v2  ;;  %v179_v16 = vmul.f32 %v176_v1, %v173_v3 }
  0xad   :  { %v181_v36 = vmul.f32 %v179_v16, %v635_v44  ;;  %v253_v16 = vstv %s720_s3  ;;  %s563_s3 = smov [#allocation9]  }
  0xae   :  { %s377_s11 = sshll.u32 %s563_s3, 4  ;;  %s378_s11 = int_to_ptr.vmem [resolvable:$true] %s377_s11 }
  0xb1   :  { %v204_v32 = vpop.permute.xlu1 %203 }
  0xb2   :  { %v626_v37 = vpop.permute.xlu0 %218  ;;  %v206_v17 = vsel %vm205_vm6, %v202_v30, %v204_v32  ;;  %v207_v18 = vsel %vm205_vm6, %v204_v32, %v202_v30  ;;  %v180_v32 = vmul.f32 %v178_v15, %v633_v43 }
  0xb3   :  { %v221_v33 = vsel %vm220_vm7, %v622_v34, %v626_v37  ;;  %v222_v30 = vsel %vm220_vm7, %v626_v37, %v622_v34  ;;  %v141_v34 = vmul.f32 %v139_v27, %v66_v47 }
  0xb9   :  { %v161_v56 = vpop.permute.xlu1 %160 }
  0xba   :  { %v163_v8 = vmul.f32 %v161_v56, %v598_v4  ;;  %v164_v9 = vmul.f32 %v161_v56, %v600_v5  ;;  %v210_v10 = vpop.permute.xlu0 %209  ;;  %v199_v4 = vmul.f32 %v197_v6, %v79_v40  ;;  %v70_v5 = vld [vmem:[#allocation8 + $0x1] ss:$4 sm:$0x3] }
  0xbb   :  { %v212_v21 = vmul.f32 %v210_v10, %v206_v17  ;;  %v213_v22 = vmul.f32 %v210_v10, %v207_v18  ;;  %v72_v45 = vperm.slane %v70_v5, 0  ;;  %v73_v46 = vperm.slane %v70_v5, 1 }
  0xbc   :  { %v165_v23 = vadd.f32 %v163_v8, %v157_v11  ;;  %v166_v24 = vadd.f32 %v164_v9, %v158_v12 }
  0xbd   :  { %v214_v40 = vadd.f32 %v212_v21, %v199_v4  ;;  %v215_v41 = vadd.f32 %v213_v22, %v200_v25 }
  0xbe   :  { %v182_v48 = vadd.f32 %v180_v32, %v165_v23  ;;  %v183_v49 = vadd.f32 %v181_v36, %v166_v24 }
  0xc0   :  { %v184_v53 = vadd.f32 %v182_v48, %v140_v31  ;;  %v185_v54 = vadd.f32 %v183_v49, %v141_v34 }
  0xc2   :  { %v225_v29 = vpop.permute.xlu1 %224 }
  0xc3   :  { %v227_v38 = vmul.f32 %v225_v29, %v221_v33  ;;  %v228_v39 = vmul.f32 %v225_v29, %v222_v30 }
  0xc5   :  { %v229_v50 = vmul.f32 %v227_v38, %v633_v43  ;;  %v230_v51 = vmul.f32 %v228_v39, %v635_v44 }
  0xc7   :  { %v231_v37 = vadd.f32 %v229_v50, %v214_v40  ;;  %v232_v52 = vadd.f32 %v230_v51, %v215_v41 }
  0xc9   :  { %v233_v55 = vmul.f32 %v231_v37, %v72_v45  ;;  %v234_v56 = vmul.f32 %v232_v52, %v73_v46 }
  0xcb   :  { %v235_v57 = vadd.f32 %v233_v55, %v184_v53  ;;  %v236_v58 = vadd.f32 %v234_v56, %v185_v54 }
  0xcd   :  { %v239_v59 = vsel %vm238_vm8, %v235_v57, 0.0  ;;  %v246_v60 = vsel %vm238_vm8, %v236_v58, 0.0  ;;  %v307_v43 = vrot.slane %v235_v57, 4  ;;  %v308_v61 = vrot.slane %v236_v58, 4 }
  0xce   :  { %v240_v44 = vrot.slane %v239_v59, 4  ;;  %v247_v62 = vrot.slane %v246_v60, 4 }
  0xcf   :  { %v311_v63 = vsel %vm238_vm8, %v307_v43, 0.0  ;;  %v318_v42 = vsel %vm238_vm8, %v308_v61, 0.0 }
  0xd0   :  { %v241_v0 = vadd.f32 %v240_v44, %v239_v59  ;;  %v248_v35 = vadd.f32 %v247_v62, %v246_v60  ;;  %v312_v47 = vrot.slane %v311_v63, 4  ;;  %v319_v1 = vrot.slane %v318_v42, 4 }
  0xd2   :  { %v242_v2 = vrot.slane %v241_v0, 2  ;;  %v249_v3 = vrot.slane %v248_v35, 2  ;;  %v313_v6 = vadd.f32 %v312_v47, %v311_v63  ;;  %v320_v7 = vadd.f32 %v319_v1, %v318_v42 }
  0xd4   :  { %v243_v8 = vadd.f32 %v242_v2, %v241_v0  ;;  %v250_v9 = vadd.f32 %v249_v3, %v248_v35  ;;  %v314_v10 = vrot.slane %v313_v6, 2  ;;  %v321_v11 = vrot.slane %v320_v7, 2 }
  0xd6   :  { %v244_v12 = vrot.slane %v243_v8, 1  ;;  %v251_v13 = vrot.slane %v250_v9, 1  ;;  %v315_v14 = vadd.f32 %v314_v10, %v313_v6  ;;  %v322_v15 = vadd.f32 %v321_v11, %v320_v7 }
  0xd8   :  { %v245_v17 = vadd.f32 %v244_v12, %v243_v8  ;;  %v252_v18 = vadd.f32 %v251_v13, %v250_v9  ;;  %v316_v19 = vrot.slane %v315_v14, 1  ;;  %v323_v20 = vrot.slane %v322_v15, 1 }
  0xda   :  { %v254_v21 = vadd.f32 %v253_v16, %v245_v17  ;;  %v255_v22 = vadd.f32 %v253_v16, %v252_v18  ;;  %v317_v23 = vadd.f32 %v316_v19, %v315_v14  ;;  %v324_v24 = vadd.f32 %v323_v20, %v322_v15 }
  0xdc   :  { %v390_v4 = vmul.f32 -1.442695, %v254_v21  ;;  %v391_v25 = vmul.f32 -1.442695, %v255_v22  ;;  %v325_v5 = vadd.f32 %v317_v23, %v253_v16  ;;  %v326_v26 = vadd.f32 %v324_v24, %v253_v16 }
  0xde   :  { %425 = vpow2.f32 %v390_v4  ;;  %v392_v27 = vmul.f32 -1.442695, %v325_v5  ;;  %v393_v29 = vmul.f32 -1.442695, %v326_v26 }
  0xdf   :  { %427 = vpow2.f32 %v391_v25 }
  0xe0   :  { %429 = vpow2.f32 %v392_v27 }
  0xe1   :  { %431 = vpow2.f32 %v393_v29 }
  0xe4   :  { %v426_v33 = vpop.eup %425 }
  0xe5   :  { %v428_v30 = vpop.eup %427  ;;  %v262_v32 = vadd.f32 1.0, %v426_v33 }
  0xe6   :  { %v430_v36 = vpop.eup %429  ;;  %v263_v38 = vadd.f32 1.0, %v428_v30 }
  0xe7   :  { %v432_v39 = vpop.eup %431  ;;  %433 = vrcp.f32 %v262_v32  ;;  %v672_v40 = vadd.f32 1.0, %v430_v36  ;;  %vm269_vm9 = vweird.f32 %v262_v32  ;;  %v273_v50 = vand.u32 2147483647, %v262_v32 }
  0xe8   :  { %435 = vrcp.f32 %v263_v38  ;;  %v334_v41 = vadd.f32 1.0, %v432_v39  ;;  %v275_v37 = vand.u32 2147483648, %v262_v32  ;;  %vm284_vm10 = vweird.f32 %v263_v38 }
  0xe9   :  { %437 = vrcp.f32 %v672_v40  ;;  %v288_v54 = vand.u32 2147483647, %v263_v38  ;;  %v290_v55 = vand.u32 2147483648, %v263_v38  ;;  %vm340_vm14 = vweird.f32 %v672_v40 }
  0xea   :  { %439 = vrcp.f32 %v334_v41  ;;  %v344_v43 = vand.u32 2147483647, %v672_v40  ;;  %v361_v28 = vand.u32 2147483648, %v334_v41  ;;  %v359_v35 = vand.u32 2147483647, %v334_v41 }
  0xeb   :  { %vm289_vm4 = vcmp.eq.f32.partialorder %v288_v54, 8.507059e+37  ;;  %v291_v47 = vor.u32 1.1754944e-38, %v290_v55  ;;  %v346_v2 = vand.u32 2147483648, %v672_v40  ;;  %vm355_vm6 = vweird.f32 %v334_v41 }
  0xec   :  { %vm274_vm7 = vcmp.eq.f32.partialorder %v273_v50, 8.507059e+37  ;;  %v276_v9 = vor.u32 1.1754944e-38, %v275_v37  ;;  %v362_v11 = vor.u32 1.1754944e-38, %v361_v28 }
  0xed   :  { %v434_v45 = vpop.eup %433  ;;  %v347_v16 = vor.u32 1.1754944e-38, %v346_v2 }
  0xee   :  { %v436_v46 = vpop.eup %435  ;;  %v265_v48 = vmul.f32 %v434_v45, %v262_v32  ;;  %vm270_vm13 = vweird.f32 %v434_v45 }
  0xef   :  { %v675_v49 = vpop.eup %437  ;;  %v280_v51 = vmul.f32 %v436_v46, %v263_v38  ;;  %vm285_vm15 = vweird.f32 %v436_v46  ;;  %vm689_vm1 = vmor %vm269_vm9, %vm270_vm13  ;;  %vm360_vm9 = vcmp.eq.f32.partialorder %v359_v35, 8.507059e+37 }
  0xf0   :  { %v440_v31 = vpop.eup %439  ;;  %v266_v34 = vsub.f32 1.0, %v265_v48  ;;  %v336_v52 = vmul.f32 %v675_v49, %v672_v40  ;;  %vm341_vm0 = vweird.f32 %v675_v49  ;;  %vm286_vm3 = vmor %vm284_vm10, %vm285_vm15  ;;  %vm345_vm10 = vcmp.eq.f32.partialorder %v344_v43, 8.507059e+37 }
  0xf1   :  { %v281_v53 = vsub.f32 1.0, %v280_v51  ;;  %v351_v57 = vmul.f32 %v440_v31, %v334_v41  ;;  %vm356_vm2 = vweird.f32 %v440_v31  ;;  %vm700_vm5 = vmor %vm340_vm14, %vm341_vm0 }
  0xf2   :  { %v267_v58 = vmul.f32 %v434_v45, %v266_v34  ;;  %v337_v59 = vsub.f32 1.0, %v336_v52  ;;  %vm357_vm8 = vmor %vm355_vm6, %vm356_vm2 }
  0xf3   :  { %v282_v60 = vmul.f32 %v436_v46, %v281_v53  ;;  %v352_v61 = vsub.f32 1.0, %v351_v57 }
  0xf4   :  { %v268_v44 = vadd.f32 %v434_v45, %v267_v58  ;;  %v338_v62 = vmul.f32 %v675_v49, %v337_v59 }
  0xf5   :  { %v283_v42 = vadd.f32 %v436_v46, %v282_v60  ;;  %v353_v0 = vmul.f32 %v440_v31, %v352_v61 }
  0xf6   :  { %v339_v1 = vadd.f32 %v675_v49, %v338_v62  ;;  %v272_v3 = vsel %vm689_vm1, %v434_v45, %v268_v44 }
  0xf7   :  { %v287_v6 = vsel %vm286_vm3, %v436_v46, %v283_v42  ;;  %v354_v8 = vadd.f32 %v440_v31, %v353_v0  ;;  %v277_v15 = vsel %vm274_vm7, %v276_v9, %v272_v3 }
  0xf8   :  { %v292_v10 = vsel %vm289_vm4, %v291_v47, %v287_v6  ;;  %v343_v13 = vsel %vm700_vm5, %v675_v49, %v339_v1 }
  0xf9   :  { %v296_v12 = vrot.slane %v292_v10, 7  ;;  %v358_v14 = vsel %vm357_vm8, %v440_v31, %v354_v8  ;;  %v348_v20 = vsel %vm345_vm10, %v347_v16, %v343_v13 }
  0xfa   :  { %v363_v17 = vsel %vm360_vm9, %v362_v11, %v358_v14 }
  0xfb   :  { %v298_v18 = vsel %vm297_vm11, %v277_v15, %v296_v12  ;;  %v367_v19 = vrot.slane %v363_v17, 7 }
  0xfc   :  { %304 = vst.msk [vmem:[#allocation9] ss:$2 sm:$0x3] %vm680_vm12, %v298_v18 }
  0xfd   :  { %v368_v21 = vsel %vm297_vm11, %v348_v20, %v367_v19 }
  0xfe   :  { %371 = vst.msk [vmem:[#allocation9 + $0x1] ss:$2 sm:$0x3] %vm680_vm12, %v368_v21 }
  0xff   :  { %382 = dma.vmem_to_hbm [thread:$0]  %s378_s11, 64, %s380_s14, [#allocation5]  }
 0x100   :  { %541 = dma.done.wait [#allocation5], 64  }
 0x101   :  { %542 = vsyncadd [#allocation5], 4294967232 }
 0x102   :  { %387 = vsyncpa [#allocation4], 1 }
 0x103   :  { %388 = vsyncpa [#allocation7], 1 }
 0x104   :  { %389 = vsyncpa [#allocation5], 1 }

</bundles_post_ra>
